<compile_context>
chip_gen: v6e
topology: v6e:2x2x1
jax: 0.10.0
libtpu: 0.0.40
codegen_flags: <defaults>
</compile_context>

<pallas_src>
import jax
import jax.numpy as jnp
from jax.experimental import pallas as pl
from jax.experimental.pallas import tpu as pltpu


def _center_loss_kernel(targets_ref, f_ref, c_ref, loss_ref, acc_ref):
    # targets_ref: SMEM (B,) int32 scalar-prefetch ref (consumed by index_maps)
    # f_ref:       VMEM (1, 1, D) feature row for this grid step
    # c_ref:       VMEM (1, 1, D) gathered center row == centers[targets[i]]
    # loss_ref:    SMEM (1, 1) f32 scalar output
    # acc_ref:     SMEM (1,) f32 running sum of clamped squared distances
    del targets_ref  # only used by the BlockSpec index_maps
    i = pl.program_id(0)
    n = pl.num_programs(0)

    @pl.when(i == 0)
    def _init():
        acc_ref[0] = jnp.float32(0.0)

    diff = f_ref[...].astype(jnp.float32) - c_ref[...].astype(jnp.float32)
    d = jnp.sum(diff * diff)             # ||f_i - c_{t_i}||^2  (>= 0 by construction)
    d = jnp.clip(d, 1e-12, 1e12)         # matches the PyTorch clamp(min=1e-12, max=1e12)
    acc_ref[0] = acc_ref[0] + d

    @pl.when(i == n - 1)
    def _finalize():
        loss_ref[0, 0] = acc_ref[0] / jnp.float32(n)   # mean over batch


def center_loss(features, centers, targets):
    """features: [B, D], centers: [C, D], targets: [B] int -> scalar f32 loss."""
    B, D = features.shape
    C, Dc = centers.shape
    assert D == Dc, (D, Dc)
    targets = targets.astype(jnp.int32)

    # Reshape to 3D so every block's trailing two dims equal the full array
    # dims (clean (8,128)-rule compliance for 1-row blocks). Reshape is free.
    f3 = features.reshape(B, 1, D)
    c3 = centers.reshape(C, 1, D)

    grid_spec = pltpu.PrefetchScalarGridSpec(
        num_scalar_prefetch=1,            # targets -> SMEM, feeds the index_maps
        grid=(B,),                        # one feature row / gathered center per step
        in_specs=[
            # features row i
            pl.BlockSpec((1, 1, D), lambda i, tgt: (i, 0, 0)),
            # data-dependent gather: centers row targets[i]
            pl.BlockSpec((1, 1, D), lambda i, tgt: (tgt[i], 0, 0)),
        ],
        out_specs=pl.BlockSpec(memory_space=pltpu.SMEM),
        scratch_shapes=[pltpu.SMEM((1,), jnp.float32)],
    )

    out = pl.pallas_call(
        _center_loss_kernel,
        out_shape=jax.ShapeDtypeStruct((1, 1), jnp.float32),
        grid_spec=grid_spec,
        compiler_params=pltpu.CompilerParams(
            # Serial accumulation over the batch axis. (For v7x one could emit
            # per-core partials with a "parallel" axis and reduce outside.)
            dimension_semantics=("arbitrary",),
        ),
    )(targets, f3, c3)
    return out[0, 0]


def center_loss_ref(features, centers, targets):
    """Pure-JAX reference mirroring the PyTorch forward exactly."""
    B = features.shape[0]
    C = centers.shape[0]
    f32 = features.astype(jnp.float32)
    c32 = centers.astype(jnp.float32)
    dist_mat = (
        jnp.sum(f32**2, axis=1, keepdims=True)
        + jnp.sum(c32**2, axis=1, keepdims=True).T
        - 2.0 * f32 @ c32.T
    )
    mask = targets[:, None] == jnp.arange(C)[None, :]
    clamped = jnp.clip(dist_mat, 1e-12, 1e12)
    return jnp.sum(jnp.where(mask, clamped, 0.0)) / B


if __name__ == "__main__":
    key = jax.random.PRNGKey(0)
    k_feat, k_cent, k_tgt = jax.random.split(key, 3)

    batch = 8          # batch_size
    num_classes = 16   # num_class
    feature_dims = 32  # cfg.MODEL.FEATURE_DIMS

    features = jax.random.normal(k_feat, (batch, feature_dims), dtype=jnp.float32)
    # nn.Parameter(torch.randn(num_classes, feature_dims)) -> normal init
    centers = jax.random.normal(k_cent, (num_classes, feature_dims), dtype=jnp.float32)
    targets = jax.random.randint(k_tgt, (batch,), 0, num_classes, dtype=jnp.int32)

    loss = center_loss(features, centers, targets)
    loss = jax.block_until_ready(loss)

    ref = center_loss_ref(features, centers, targets)
    assert jnp.allclose(loss, ref, rtol=1e-4, atol=1e-4), (loss, ref)

    print("KERNEL_OK")
</pallas_src>

<mosaic_0001>
module attributes {stable_mosaic.version = 11 : i64} {
  func.func @_center_loss_kernel(%arg0: i32, %arg1: memref<8xi32, #tpu.memory_space<smem>>, %arg2: memref<1x1x32xf32, #tpu.memory_space<vmem>>, %arg3: memref<1x1x32xf32, #tpu.memory_space<vmem>>, %arg4: memref<1x1xf32, #tpu.memory_space<smem>>, %arg5: memref<1xf32, #tpu.memory_space<smem>>) attributes {dimension_semantics = [#tpu.dimension_semantics<arbitrary>], iteration_bounds = array<i64: 8>, scalar_prefetch = 1 : i64, scratch_operands = 1 : i64, tpu.core_type = #tpu.core_type<tc>, window_params = [{transform_indices = @transform_0, window_bounds = array<i64: 1, 1, 32>}, {transform_indices = @transform_1, window_bounds = array<i64: 1, 1, 32>}, {transform_indices = @transform_2, window_bounds = array<i64: 1, 1>}]} {
    %c0_i32 = arith.constant 0 : i32
    %0 = arith.cmpi eq, %arg0, %c0_i32 : i32
    %1 = arith.extui %0 : i1 to i32
    %c0_i32_0 = arith.constant 0 : i32
    %2 = arith.cmpi ne, %1, %c0_i32_0 : i32
    scf.if %2 {
      %cst_11 = arith.constant 0.000000e+00 : f32
      %c0_12 = arith.constant 0 : index
      %19 = memref.load %arg5[%c0_12] : memref<1xf32, #tpu.memory_space<smem>>
      memref.store %cst_11, %arg5[%c0_12] : memref<1xf32, #tpu.memory_space<smem>>
    } else {
    }
    %c0 = arith.constant 0 : index
    %c0_1 = arith.constant 0 : index
    %c0_2 = arith.constant 0 : index
    %3 = vector.load %arg2[%c0, %c0_1, %c0_2] : memref<1x1x32xf32, #tpu.memory_space<vmem>>, vector<1x1x32xf32>
    %c0_3 = arith.constant 0 : index
    %c0_4 = arith.constant 0 : index
    %c0_5 = arith.constant 0 : index
    %4 = vector.load %arg3[%c0_3, %c0_4, %c0_5] : memref<1x1x32xf32, #tpu.memory_space<vmem>>, vector<1x1x32xf32>
    %5 = arith.subf %3, %4 : vector<1x1x32xf32>
    %6 = arith.mulf %5, %5 : vector<1x1x32xf32>
    %7 = vector.shape_cast %6 : vector<1x1x32xf32> to vector<1x1x1x32xf32>
    %cst = arith.constant dense<0.000000e+00> : vector<1xf32>
    %8 = vector.multi_reduction <add>, %7, %cst [1, 2, 3] : vector<1x1x1x32xf32> to vector<1xf32>
    %9 = vector.shape_cast %8 : vector<1xf32> to vector<1x1x1x1xf32>
    %10 = vector.extract %9[0, 0, 0, 0] : f32 from vector<1x1x1x1xf32>
    %cst_6 = arith.constant 9.99999996E-13 : f32
    %cst_7 = arith.constant 9.99999995E+11 : f32
    %11 = arith.maximumf %cst_6, %10 : f32
    %12 = arith.minimumf %cst_7, %11 : f32
    %c0_8 = arith.constant 0 : index
    %13 = memref.load %arg5[%c0_8] : memref<1xf32, #tpu.memory_space<smem>>
    %14 = arith.addf %13, %12 : f32
    %c0_9 = arith.constant 0 : index
    %15 = memref.load %arg5[%c0_9] : memref<1xf32, #tpu.memory_space<smem>>
    memref.store %14, %arg5[%c0_9] : memref<1xf32, #tpu.memory_space<smem>>
    %c7_i32 = arith.constant 7 : i32
    %16 = arith.cmpi eq, %arg0, %c7_i32 : i32
    %17 = arith.extui %16 : i1 to i32
    %c0_i32_10 = arith.constant 0 : i32
    %18 = arith.cmpi ne, %17, %c0_i32_10 : i32
    scf.if %18 {
      %c0_11 = arith.constant 0 : index
      %19 = memref.load %arg5[%c0_11] : memref<1xf32, #tpu.memory_space<smem>>
      %cst_12 = arith.constant 8.000000e+00 : f32
      %20 = arith.divf %19, %cst_12 : f32
      %c0_13 = arith.constant 0 : index
      %c0_14 = arith.constant 0 : index
      %21 = memref.load %arg4[%c0_13, %c0_14] : memref<1x1xf32, #tpu.memory_space<smem>>
      memref.store %20, %arg4[%c0_13, %c0_14] : memref<1x1xf32, #tpu.memory_space<smem>>
    } else {
    }
    return
  }
  func.func @transform_0(%arg0: i32, %arg1: memref<8xi32, #tpu.memory_space<smem>>) -> (i32, i32, i32) {
    %c0_i32 = arith.constant 0 : i32
    %c0_i32_0 = arith.constant 0 : i32
    %c0_i32_1 = arith.constant 0 : i32
    return %arg0, %c0_i32, %c0_i32_0 : i32, i32, i32
  }
  func.func @transform_1(%arg0: i32, %arg1: memref<8xi32, #tpu.memory_space<smem>>) -> (i32, i32, i32) {
    %0 = arith.index_cast %arg0 : i32 to index
    %1 = memref.load %arg1[%0] : memref<8xi32, #tpu.memory_space<smem>>
    %c0_i32 = arith.constant 0 : i32
    %c0_i32_0 = arith.constant 0 : i32
    %c0_i32_1 = arith.constant 0 : i32
    return %1, %c0_i32, %c0_i32_0 : i32, i32, i32
  }
  func.func @transform_2(%arg0: i32, %arg1: memref<8xi32, #tpu.memory_space<smem>>) -> (i32, i32) {
    %c0_i32 = arith.constant 0 : i32
    %c0_i32_0 = arith.constant 0 : i32
    %c0_i32_1 = arith.constant 0 : i32
    return %c0_i32, %c0_i32_0 : i32, i32
  }
}

</mosaic_0001>

<bundles_post_ra>
// kernel: tpu_custom_call.1
= control target key start
LH: loop header
LB: loop body
LE: loop exit
PB: predicated region body
PF: predicated region fallthrough
CT: control target
= control target key end

     0   :  { %s544_s12 = smov [#allocation4]   ;;  %s772_s0 = inlined_call_operand.hbm [shape: s32[8], index: 0, kind: input, shape index: {}]   ;;  %s773_s1 = inlined_call_operand.hbm [shape: f32[8,1,32], index: 1, kind: input, shape index: {}]   ;;  %s774_s2 = inlined_call_operand.hbm [shape: f32[16,1,32], index: 2, kind: input, shape index: {}]   ;;  %s775_s3 = inlined_call_operand.hbm [shape: f32[1,1], index: 3, kind: output, shape index: {}]  }
   0x1   :  { %9 = dma.hbm_to_smem %s772_s0, 16, %s544_s12, [#allocation3] }
   0x2   :  { %502 = dma.done.wait [#allocation3], 16 }
   0x3   :  { %503 = vsyncadd [#allocation3], 4294967280 }
   0x4   :  { %11 = sfence }
   0x5   :  { %12 = vsyncpa [#allocation6], 0 }
   0x6   :  { %14 = vsyncpa [#allocation6 + $0x1], 0 }
   0x7   :  { %15 = vsyncpa [#allocation9], 0 }
   0x8   :  { %17 = vsyncpa [#allocation9 + $0x1], 0 }
   0x9   :  { %18 = vsyncpa [#allocation7], 0  ;;  %s574_s15 = smov 0   ;;  %s576_s16 = smov 0  }
   0xa   :  { %s578_s17 = smov 0   ;;  %s580_s18 = smov 0  }
   0xb   :  { %s582_s19 = smov 0   ;;  %s584_s20 = smov 0  }
   0xc   :  { %s586_s0 = smov 0  }
   0xd LB: > { %s297_s21 = sadd.s32 4294967295, %s542_s0   ;;  %s609_s22 = sadd.s32 1, %s542_s0   ;;  %s542_s0 = sphi %s586_s0, %s804_s0   ;;  %s538_s20 = sphi %s584_s20, %s803_s20   ;;  %s534_s19 = sphi %s582_s19, %s802_s19   ;;  %s530_s18 = sphi %s580_s18, %s801_s18   ;;  %s526_s17 = sphi %s578_s17, %s800_s17   ;;  %s522_s16 = sphi %s576_s16, %s799_s16   ;;  %s518_s15 = sphi %s574_s15, %s798_s15  }
   0xe   : > { %s28_s23 = ssub.s32 %s542_s0, %s609_s22  ;;  %s31_s24 = sadd.s32 1, %s538_s20 }
   0xf   : > { %p29_p0 = scmp.eq.s32.totalorder %s28_s23, 0  ;;  %p38_p1 = scmp.ne.s32.totalorder %s538_s20, %s534_s19 }
  0x10   : > { %p777_p2 = scmp.eq.s32.totalorder %s542_s0, 0  ;;  %p44_p3 = scmp.ne.s32.totalorder %s534_s19, %s530_s18 }
  0x11   : > { %s619_s25 = scalar_select %p29_p0, %s538_s20, %s31_s24  }
  0x12   : > { %p40_p4 = por %p777_p2, %p38_p1  ;;  %p625_p5 = scmp.eq.s32.totalorder %s297_s21, 0 }
  0x13   : > { %s630_s27 = sld [smem:[#allocation4 + %s609_s22]]  ;;  %p776_p7 = scmp.lt.s32.totalorder %s542_s0, 8 }
  0x14   : > { %s781_s26 = scalar_select %p625_p5, 1, 0 }
  0x15   : > { %p634_p6 = por %p625_p5, %p44_p3  ;;  %s117_s29 = sand.u32 1, %s538_s20  }
  0x16   : > { %s300_s30 = sshll.u32 %s542_s0, 4  ;;  %s120_s7 = scalar_lea.vmem [#allocation5], %s117_s29 }
  0x17   : > { %s782_s28 = scalar_select %p634_p6, 1, 0 }
  0x18   : > { %s644_s6 = scalar_lea.hbm %s773_s1, %s300_s30  ;;  %s127_s8 = sshll.u32 %s120_s7, 4  ;;  %s646_s8 = int_to_ptr.vmem [resolvable:$true] %s127_s8 }
  0x19   : > { %p650_p8 = pnand %p776_p7, %p40_p4  ;;  %s118_s10 = scalar_lea.sflag [#allocation6], %s117_s29 }
  0x1a   : > { %s408_s11 = scalar_lea.hbm %s644_s6, 16  ;;  %s413_s14 = scalar_lea.hbm %s773_s1, 128 }
  0x1b   : > { %p409_p11 = scmp.ne.s32.totalorder %s644_s6, %s408_s11  ;;  %p410_p12 = pneg %p650_p8 }
  0x1c   : > { %p414_p1 = scmp.lt.s32.totalorder %s644_s6, %s773_s1  ;;  %p415_p3 = scmp.lt.s32.totalorder %s413_s14, %s408_s11 }
  0x1d   : > { %p411_p13 = pnand %p410_p12, %p409_p11 }
  0x1e   : > { %p416_p4 = por %p415_p3, %p414_p1 }
  0x1f   : > { %p412_p0 = pneg %p411_p13 }
  0x21   : > { %p417_p7 = pnand %p416_p4, %p412_p0 }
  0x23   : > { %420 = shalt.err (!%p417_p7)
}
  0x24   : > { %s421_s24 = scalar_lea.vmem %s646_s8, 16  ;;  %s545_s29 = smov [#allocation5]  }
  0x25   : > { %p422_p2 = scmp.ne.s32.totalorder %s646_s8, %s421_s24  ;;  %s426_s30 = sshll.u32 %s545_s29, 4  ;;  %s427_s30 = int_to_ptr.vmem [resolvable:$false] %s426_s30 }
  0x26   : > { %s428_s4 = scalar_lea.vmem %s427_s30, 32  ;;  %p429_p13 = scmp.lt.s32.totalorder %s646_s8, %s427_s30 }
  0x27   : > { %p424_p9 = pnand %p422_p2, %p410_p12  ;;  %p430_p10 = scmp.lt.s32.totalorder %s428_s4, %s421_s24 }
  0x29   : > { %p425_p11 = pneg %p424_p9  ;;  %p431_p6 = por %p430_p10, %p429_p13 }
  0x2b   : > { %p432_p5 = pnand %p431_p6, %p425_p11 }
  0x2d   : > { %435 = shalt.err (!%p432_p5)
}
  0x2e   : > { %328 = dma.hbm_to_vmem [thread:$0]  (!%p650_p8), %s644_s6, 16, %s646_s8, %s118_s10  }
  0x2f   : > { %p784_p2 = scmp.lt.s32.totalorder %s542_s0, 9  ;;  %p785_p5 = scmp.ge.s32.totalorder %s542_s0, 1 }
  0x30   : > { %s54_s7 = sld [smem:[#allocation4 + %s542_s0]]  ;;  %p66_p7 = scmp.ne.s32.totalorder %s526_s17, %s522_s16 }
  0x31   : > { %p678_p6 = pnand %p785_p5, %p784_p2  ;;  %p72_p9 = scmp.ne.s32.totalorder %s522_s16, %s518_s15 }
  0x32   : > { %p787_p10 = scmp.eq.s32.totalorder %s542_s0, 0  ;;  %p788_p0 = scmp.ne.s32.totalorder %s781_s26, 0 }
  0x33   : > { %s786_s5 = scalar_select %p678_p6, 1, 0 }
  0x34   : > { %p68_p12 = por %p66_p7, %p787_p10  ;;  %p691_p1 = por %p72_p9, %p788_p0 }
  0x35   : > { %s59_s6 = sadd.s32 1, %s526_s17  ;;  %s134_s8 = sand.u32 1, %s526_s17  }
  0x36   : > { %s789_s9 = scalar_select %p691_p1, 1, 0 }
  0x37   : > { %s312_s11 = scalar_select %p68_p12, [#allocation4], [#allocation11] }
  0x38   : > { %s56_s12 = ssub.s32 %s54_s7, %s630_s27  ;;  %p790_p3 = scmp.lt.s32.totalorder %s542_s0, 8 }
  0x39   : > { %p57_p8 = scmp.eq.s32.totalorder %s56_s12, 0  ;;  %s137_s18 = scalar_lea.vmem [#allocation8], %s134_s8 }
  0x3a   : > { %s313_s10 = scalar_select %p68_p12, %s542_s0, 0 }
  0x3b   : > { %s700_s13 = scalar_select %p57_p8, %s526_s17, %s59_s6  }
  0x3c   : > { %s806_s11 = smov (!%p790_p3, %s312_s11), [#allocation12]  ;;  %p791_p4 = pmov %p790_p3 }
  0x3d   : > { %p792_p11 = pmov %p790_p3  ;;  %s145_s23 = sshll.u32 %s137_s18, 4  ;;  %s712_s23 = int_to_ptr.vmem [resolvable:$true] %s145_s23 }
  0x3e   : > { %s808_s10 = smov (!%p791_p4, %s313_s10), 0  ;;  %s135_s4 = scalar_lea.sflag [#allocation9], %s134_s8 }
  0x3f   : > { %p708_p13 = pnand %p792_p11, %p68_p12  ;;  %s138_s14 = sld [smem:[%s806_s11 + %s808_s10]] }
  0x40   : > { %s441_s11 = scalar_lea.hbm %s774_s2, 256 }
  0x41   : > { %p438_p5 = pneg %p708_p13 }
  0x45   : > { %s301_s27 = sshll.u32 %s138_s14, 4 }
  0x46   : > { %s143_s30 = scalar_lea.hbm %s774_s2, %s301_s27 }
  0x47   : > { %s436_s7 = scalar_lea.hbm %s143_s30, 16  ;;  %p442_p10 = scmp.lt.s32.totalorder %s143_s30, %s774_s2 }
  0x48   : > { %p437_p2 = scmp.ne.s32.totalorder %s143_s30, %s436_s7  ;;  %p443_p12 = scmp.lt.s32.totalorder %s441_s11, %s436_s7 }
  0x4a   : > { %p439_p7 = pnand %p438_p5, %p437_p2  ;;  %p444_p0 = por %p443_p12, %p442_p10 }
  0x4c   : > { %p440_p9 = pneg %p439_p7 }
  0x4e   : > { %p445_p8 = pnand %p444_p0, %p440_p9 }
  0x50   : > { %448 = shalt.err (!%p445_p8)
}
  0x51   : > { %s449_s8 = scalar_lea.vmem %s712_s23, 16  ;;  %s546_s14 = smov [#allocation8]  }
  0x52   : > { %p450_p3 = scmp.ne.s32.totalorder %s712_s23, %s449_s8  ;;  %s454_s27 = sshll.u32 %s546_s14, 4  ;;  %s455_s27 = int_to_ptr.vmem [resolvable:$false] %s454_s27 }
  0x53   : > { %s456_s24 = scalar_lea.vmem %s455_s27, 32  ;;  %p457_p2 = scmp.lt.s32.totalorder %s712_s23, %s455_s27 }
  0x54   : > { %p452_p4 = pnand %p450_p3, %p438_p5  ;;  %p458_p7 = scmp.lt.s32.totalorder %s456_s24, %s449_s8 }
  0x56   : > { %p453_p11 = pneg %p452_p4  ;;  %p459_p1 = por %p458_p7, %p457_p2 }
  0x58   : > { %p460_p6 = pnand %p459_p1, %p453_p11 }
  0x5a   : > { %463 = shalt.err (!%p460_p6)
}
  0x5b   : > { %333 = dma.hbm_to_vmem [thread:$0]  (!%p708_p13), %s143_s30, 16, %s712_s23, %s135_s4  }
  0x5c   : > { %p794_p9 = scmp.ne.s32.totalorder %s786_s5, 0 }
  0x5d   : > { %s156_s29 = sand.u32 (!%p794_p9), 1, %s534_s19   ;;  %p795_p5 = scmp.ne.s32.totalorder (!%p794_p9), %s782_s28, 0 }
  0x5e   : > { %154 = sbr.rel (%p794_p9) target bundleno = 321 (0x141), region = 28  ;;  %s157_s7 = scalar_lea.sflag (!%p794_p9), [#allocation6], %s156_s29 }
  0x5f   : > { %s159_s12 = scalar_lea.vmem (!%p794_p9), [#allocation5], %s156_s29 }
  0x63   : > { %505 = dma.done.wait (%p795_p5), %s157_s7, 16  }
  0x64   : > { %507 = vsyncadd (%p795_p5), %s157_s7, 4294967280  ;;  %s164_s6 = sand.u32 1, %s522_s16   ;;  %p796_p6 = scmp.ne.s32.totalorder %s789_s9, 0 }
  0x65   : > { %s165_s11 = scalar_lea.sflag [#allocation9], %s164_s6  ;;  %s167_s15 = scalar_lea.vmem [#allocation8], %s164_s6 }
  0x66   : > { %509 = dma.done.wait (%p796_p6), %s165_s11, 16  }
  0x67   : > { %511 = vsyncadd (%p796_p6), %s165_s11, 4294967280  ;;  %v193_v0 = vld [vmem:[%s159_s12] sm:$0x1]  ;;  %vm197_vm0 = vcmask 253952   ;;  %s547_s28 = smov 0.0   ;;  %p797_p1 = scmp.ne.s32.totalorder %s781_s26, 0 }
  0x68   : > { %v194_v1 = vld [vmem:[%s167_s15] sm:$0x1]  ;;  %s548_s23 = smov 1e-12   ;;  %s549_s4 = smov 1e+12  }
  0x69   : > { %v195_v2 = vsub.f32 %v193_v0, %v194_v1  ;;  %318 = sst [smem:[#allocation2]] (%p797_p1), %s547_s28  ;;  %p336_p13 = scmp.eq.s32.totalorder %s297_s21, 7 }
  0x6a   : > { %s210_s5 = sld [smem:[#allocation2]]  ;;  %s550_s8 = smov [#allocation10]  }
  0x6b   : > { %v196_v3 = vmul.f32 %v195_v2, %v195_v2 }
  0x6d   : > { %v198_v4 = vsel %vm197_vm0, %v196_v3, 0.0 }
  0x6e   : > { %199 = vadd.xlane.f32.xlu0 %v198_v4 }
  0xf7   : > { %v200_v5 = vpop.xlane.xlu0 %199 }
  0xf8   : > { %v201_v6 = vrot.slane %v200_v5, 4 }
  0xfa   : > { %v202_v7 = vadd.f32 %v201_v6, %v200_v5 }
  0xfc   : > { %v203_v8 = vrot.slane %v202_v7, 2 }
  0xfe   : > { %v204_v9 = vadd.f32 %v203_v8, %v202_v7 }
 0x100   : > { %v205_v10 = vrot.slane %v204_v9, 1 }
 0x102   : > { %v206_v11 = vadd.f32 %v205_v10, %v204_v9 }
 0x104   : > { %309 = vpush %v206_v11 }
 0x135   : > { %s310_s9 = spop %309 }
 0x136   : > { %s208_s30 = smax.f32 %s548_s23, %s310_s9 }
 0x137   : > { %s209_s10 = smin.f32 %s549_s4, %s208_s30 }
 0x138   : > { %s211_s18 = sadd.f32 %s210_s5, %s209_s10 }
 0x13a   : > { %213 = sst [smem:[#allocation2]] %s211_s18  ;;  %s221_s26 = smul.f32 0.125, %s211_s18 }
 0x13c   : > { %320 = sst [smem:[#allocation10]] (%p336_p13), %s221_s26 }
 0x13d   : > { %322 = dma.smem_to_hbm (%p336_p13), %s550_s8, 16, %s775_s3, [#allocation7]  }
 0x13e   : > { %513 = dma.done.wait (%p336_p13), [#allocation7], 16  }
 0x13f   : > { %515 = vsyncadd (%p336_p13), [#allocation7], 4294967280 }
 0x140   : > { %237 = sfence }
 0x141 PF: > { %p21_p10 = scmp.ge.s32.totalorder %s609_s22, 10   ;;  %s798_s15 = smov %s522_s16 }
 0x142   : > { %s799_s16 = smov %s526_s17  ;;  %s800_s17 = smov %s700_s13 }
 0x143   : > { %s801_s18 = smov %s534_s19  ;;  %s802_s19 = smov %s538_s20 }
 0x144   : > { %s803_s20 = smov %s619_s25  ;;  %s804_s0 = smov %s609_s22 }
 0x145   :  { %23 = sbr.rel (!%p21_p10) target bundleno = 13 (0xd), region = 89 }
 0x14a   :  { %243 = vsyncpa [#allocation6], 1 }
 0x14b   :  { %245 = vsyncpa [#allocation6 + $0x1], 1 }
 0x14c   :  { %246 = vsyncpa [#allocation9], 1 }
 0x14d   :  { %248 = vsyncpa [#allocation9 + $0x1], 1 }
 0x14e   :  { %249 = vsyncpa [#allocation7], 1 }
 0x14f   :  { %251 = vsyncpa [#allocation7 + $0x1], 1 }

</bundles_post_ra>
